<compile_context>
chip_gen: v7x
topology: tpu7x:2x2x1
jax: 0.10.0
libtpu: 0.0.40
codegen_flags: <defaults>
</compile_context>

<pallas_src>
import functools

import jax
import jax.numpy as jnp
from jax import lax
from jax.experimental import pallas as pl
from jax.experimental.pallas import tpu as pltpu


# ----------------------------------------------------------------------------
# Kernel 1: tiled dense linear  y = x @ W_t + b
#   W_t is pre-transposed (E_in, E_out) and already bf16; x tile is cast to bf16
#   in-kernel; accumulation is f32 in VMEM scratch.
# ----------------------------------------------------------------------------
def _linear_kernel(x_ref, w_ref, b_ref, o_ref, acc_ref):
    @pl.when(pl.program_id(2) == 0)
    def _():
        acc_ref[...] = jnp.zeros_like(acc_ref)

    acc_ref[...] += jnp.dot(x_ref[...].astype(jnp.bfloat16),
                            w_ref[...].astype(jnp.bfloat16),
                            preferred_element_type=jnp.float32)

    @pl.when(pl.program_id(2) == pl.num_programs(2) - 1)
    def _():
        o_ref[...] = (acc_ref[...] + b_ref[...]).astype(o_ref.dtype)


def pallas_linear(x2d, w_t, b, *, out_dtype=jnp.float32, tm=512, tn=512, tk=512):
    """x2d: (N, E_in), w_t: (E_in, E_out) pre-transposed bf16, b: (E_out,) f32."""
    n, e_in = x2d.shape
    e_out = w_t.shape[1]
    tm = min(tm, n)
    tn = min(tn, e_out)
    tk = min(tk, e_in)
    grid = (pl.cdiv(n, tm), pl.cdiv(e_out, tn), pl.cdiv(e_in, tk))
    return pl.pallas_call(
        _linear_kernel,
        out_shape=jax.ShapeDtypeStruct((n, e_out), out_dtype),
        grid_spec=pltpu.PrefetchScalarGridSpec(
            num_scalar_prefetch=0,
            grid=grid,
            in_specs=[
                pl.BlockSpec((tm, tk), lambda i, j, k: (i, k)),
                pl.BlockSpec((tk, tn), lambda i, j, k: (k, j)),
                pl.BlockSpec((1, tn), lambda i, j, k: (0, j)),
            ],
            out_specs=pl.BlockSpec((tm, tn), lambda i, j, k: (i, j)),
            scratch_shapes=[pltpu.VMEM((tm, tn), jnp.float32)],
        ),
        compiler_params=pltpu.CompilerParams(
            dimension_semantics=("parallel", "parallel", "arbitrary")),
    )(x2d, w_t, b.astype(jnp.float32).reshape(1, e_out))


# ----------------------------------------------------------------------------
# Kernel 2: attention core — one (batch, q-tile) per grid step, all heads inside.
#   q already carries the 1/sqrt(head_dim) scaling (folded into the projection).
#   Heads are processed in lane-aligned GROUPS (group width = 128 lanes when
#   head_dim < 128) so loads/stores stay lane-dense and live values stay small.
# ----------------------------------------------------------------------------
def _attn_kernel(q_ref, k_ref, v_ref, o_ref, w_ref, *,
                 num_heads, head_dim, heads_per_group):
    inv_heads = 1.0 / num_heads
    n_groups = -(-num_heads // heads_per_group)
    contract_last = (((1,), (1,)), ((), ()))   # q @ k^T without materializing k.T

    for g in range(n_groups):
        g_heads = min(heads_per_group, num_heads - g * heads_per_group)
        lo_g = g * heads_per_group * head_dim
        width = g_heads * head_dim

        # Lane-aligned group slabs (start offsets are multiples of 128 lanes or 0).
        q_g = q_ref[:, lo_g:lo_g + width]
        k_g = k_ref[:, lo_g:lo_g + width]
        v_g = v_ref[:, lo_g:lo_g + width]

        outs = []
        for hh in range(g_heads):
            h = g * heads_per_group + hh
            lo = hh * head_dim
            qh = q_g[:, lo:lo + head_dim]
            kh = k_g[:, lo:lo + head_dim]
            vh = v_g[:, lo:lo + head_dim]

            s = lax.dot_general(qh, kh, contract_last,
                                preferred_element_type=jnp.float32)      # (tq, S) f32
            m = jnp.max(s, axis=-1, keepdims=True)
            p = jnp.exp(s - m)
            p = p * pl.reciprocal(jnp.sum(p, axis=-1, keepdims=True), approx=True)

            # Head-averaged attention weights accumulated directly into the output ref
            # (no (tq, S) value carried live across the unrolled loop).
            if num_heads == 1:
                w_ref[...] = p
            elif h == 0:
                w_ref[...] = p
            elif h == num_heads - 1:
                w_ref[...] = (w_ref[...] + p) * inv_heads
            else:
                w_ref[...] += p

            outs.append(jnp.dot(p.astype(vh.dtype), vh,
                                preferred_element_type=jnp.float32))     # (tq, hd) f32

        out_g = outs[0] if g_heads == 1 else jnp.concatenate(outs, axis=-1)
        o_ref[:, lo_g:lo_g + width] = out_g.astype(o_ref.dtype)


def pallas_attention_core(q_arr, k_arr, v_arr, num_heads, embed_dim, *,
                          q_col=0, k_col=0, v_col=0, tq=256):
    """q_arr: (B, T, *), k_arr/v_arr: (B, S, *); *_col selects which embed_dim-wide
    column block of a (possibly packed) last dim to read.  Returns
    (out (B, T, E) bf16, weights (B, T, S) f32)."""
    b, t, _ = q_arr.shape
    s = k_arr.shape[1]
    head_dim = embed_dim // num_heads
    tq = min(tq, t)

    # Group heads so each o_ref store spans a multiple of 128 lanes when possible.
    if head_dim % 128 == 0:
        heads_per_group = 1
    elif (128 % head_dim == 0) and (num_heads * head_dim >= 128):
        heads_per_group = min(128 // head_dim, num_heads)
    else:
        heads_per_group = num_heads

    # Explicit VMEM budget (important on v7x's 64 MiB): q/o double-buffered,
    # K/V single-buffered, w double-buffered f32.
    bytes_q = 2 * tq * embed_dim * q_arr.dtype.itemsize
    bytes_kv = s * embed_dim * (k_arr.dtype.itemsize + v_arr.dtype.itemsize)
    bytes_o = 2 * tq * embed_dim * 2
    bytes_w = 2 * tq * s * 4
    vmem_limit = int(1.3 * (bytes_q + bytes_kv + bytes_o + bytes_w)) + (8 << 20)
    vmem_limit = min(max(vmem_limit, 32 << 20), 100 << 20)

    kernel = functools.partial(_attn_kernel, num_heads=num_heads,
                               head_dim=head_dim, heads_per_group=heads_per_group)
    grid = (b, pl.cdiv(t, tq))
    return pl.pallas_call(
        kernel,
        out_shape=(
            jax.ShapeDtypeStruct((b, t, embed_dim), jnp.bfloat16),
            jax.ShapeDtypeStruct((b, t, s), jnp.float32),
        ),
        grid_spec=pltpu.PrefetchScalarGridSpec(
            num_scalar_prefetch=0,
            grid=grid,
            in_specs=[
                pl.BlockSpec((None, tq, embed_dim),
                             lambda bi, qi: (bi, qi, q_col)),
                # K/V only change per batch -> single buffer saves VMEM; their refill
                # is amortized over all q-tiles of that batch.
                pl.BlockSpec((None, s, embed_dim),
                             lambda bi, qi: (bi, 0, k_col),
                             pipeline_mode=pl.Buffered(buffer_count=1)),
                pl.BlockSpec((None, s, embed_dim),
                             lambda bi, qi: (bi, 0, v_col),
                             pipeline_mode=pl.Buffered(buffer_count=1)),
            ],
            out_specs=(
                pl.BlockSpec((None, tq, embed_dim), lambda bi, qi: (bi, qi, 0)),
                pl.BlockSpec((None, tq, s), lambda bi, qi: (bi, qi, 0)),
            ),
        ),
        compiler_params=pltpu.CompilerParams(
            dimension_semantics=("parallel", "parallel"),
            vmem_limit_bytes=vmem_limit),
    )(q_arr, k_arr, v_arr)


# ----------------------------------------------------------------------------
# Parameter init (deterministic synthetic): xavier_uniform for weights,
# small uniform for biases (module's _reset_parameters only touches dim>1).
# ----------------------------------------------------------------------------
def _xavier_uniform(key, shape):
    fan_out, fan_in = shape
    bound = (6.0 / (fan_in + fan_out)) ** 0.5
    return jax.random.uniform(key, shape, jnp.float32, -bound, bound)


def init_params(key, embed_dim):
    keys = jax.random.split(key, 8)
    params = {}
    for i, name in enumerate(("q", "k", "v", "out")):
        params[f"{name}_w"] = _xavier_uniform(keys[2 * i], (embed_dim, embed_dim))
        bb = 1.0 / (embed_dim ** 0.5)
        params[f"{name}_b"] = jax.random.uniform(
            keys[2 * i + 1], (embed_dim,), jnp.float32, -bb, bb)
    return params


def prepare_mha_weights(params, embed_dim, num_heads):
    """One-time packing: transpose to (E_in, E_out), fold the 1/sqrt(head_dim) scale
    into the Q projection, build fused QKV / KV weights, cast weights to bf16."""
    head_dim = embed_dim // num_heads
    scaling = float(head_dim) ** (-0.5)
    wq_t = (params["q_w"] * scaling).T
    bq = params["q_b"] * scaling
    wk_t = params["k_w"].T
    wv_t = params["v_w"].T
    wo_t = params["out_w"].T
    bf = jnp.bfloat16
    return {
        "w_q": wq_t.astype(bf), "b_q": bq,
        "w_k": wk_t.astype(bf), "b_k": params["k_b"],
        "w_v": wv_t.astype(bf), "b_v": params["v_b"],
        "w_kv": jnp.concatenate([wk_t, wv_t], axis=1).astype(bf),
        "b_kv": jnp.concatenate([params["k_b"], params["v_b"]]),
        "w_qkv": jnp.concatenate([wq_t, wk_t, wv_t], axis=1).astype(bf),
        "b_qkv": jnp.concatenate([bq, params["k_b"], params["v_b"]]),
        "w_out": wo_t.astype(bf), "b_out": params["out_b"],
    }


# ----------------------------------------------------------------------------
# Full forward (mirrors multi_head_attention_forward)
# ----------------------------------------------------------------------------
def my_multihead_attention(prepared, query, key, value, num_heads, dropout_p=0.0):
    # TODO(synk): attn_mask / key_padding_mask / dropout not wired in (None / 0.0 here).
    tgt_len, bsz, embed_dim = query.shape
    src_len = key.shape[0]

    # Batch-major activations so the attention kernel grids over batch and keeps the
    # embed axis lane-dense.
    q_in = query.transpose(1, 0, 2).reshape(bsz * tgt_len, embed_dim)

    packed_ok = (embed_dim % 128 == 0)   # column-block index maps need 128-lane blocks

    if (query is key) and (key is value):
        # Self-attention: fused QKV projection, packed output fed straight to the
        # attention core via column-block index maps (no JAX slicing round trip).
        qkv2d = pallas_linear(q_in, prepared["w_qkv"], prepared["b_qkv"],
                              out_dtype=jnp.bfloat16)                       # (B*T, 3E)
        if packed_ok:
            qkv = qkv2d.reshape(bsz, tgt_len, 3 * embed_dim)
            attn_out, attn_w = pallas_attention_core(
                qkv, qkv, qkv, num_heads, embed_dim, q_col=0, k_col=1, v_col=2)
        else:
            q_ble = qkv2d[:, :embed_dim].reshape(bsz, tgt_len, embed_dim)
            k_ble = qkv2d[:, embed_dim:2 * embed_dim].reshape(bsz, src_len, embed_dim)
            v_ble = qkv2d[:, 2 * embed_dim:].reshape(bsz, src_len, embed_dim)
            attn_out, attn_w = pallas_attention_core(
                q_ble, k_ble, v_ble, num_heads, embed_dim)
    elif key is value:
        # Encoder-decoder cross attention: fused K/V projection over the shared memory.
        q2d = pallas_linear(q_in, prepared["w_q"], prepared["b_q"],
                            out_dtype=jnp.bfloat16)
        kv_in = key.transpose(1, 0, 2).reshape(bsz * src_len, embed_dim)
        kv2d = pallas_linear(kv_in, prepared["w_kv"], prepared["b_kv"],
                             out_dtype=jnp.bfloat16)                        # (B*S, 2E)
        q_ble = q2d.reshape(bsz, tgt_len, embed_dim)
        if packed_ok:
            kv = kv2d.reshape(bsz, src_len, 2 * embed_dim)
            attn_out, attn_w = pallas_attention_core(
                q_ble, kv, kv, num_heads, embed_dim, k_col=0, v_col=1)
        else:
            k_ble = kv2d[:, :embed_dim].reshape(bsz, src_len, embed_dim)
            v_ble = kv2d[:, embed_dim:].reshape(bsz, src_len, embed_dim)
            attn_out, attn_w = pallas_attention_core(
                q_ble, k_ble, v_ble, num_heads, embed_dim)
    else:
        q2d = pallas_linear(q_in, prepared["w_q"], prepared["b_q"],
                            out_dtype=jnp.bfloat16)
        k_in = key.transpose(1, 0, 2).reshape(bsz * src_len, embed_dim)
        v_in = value.transpose(1, 0, 2).reshape(bsz * src_len, embed_dim)
        k2d = pallas_linear(k_in, prepared["w_k"], prepared["b_k"],
                            out_dtype=jnp.bfloat16)
        v2d = pallas_linear(v_in, prepared["w_v"], prepared["b_v"],
                            out_dtype=jnp.bfloat16)
        attn_out, attn_w = pallas_attention_core(
            q2d.reshape(bsz, tgt_len, embed_dim),
            k2d.reshape(bsz, src_len, embed_dim),
            v2d.reshape(bsz, src_len, embed_dim),
            num_heads, embed_dim)

    # Output projection on the flattened (B*T, E) bf16 activation, back to [T, B, E] f32.
    z2d = pallas_linear(attn_out.reshape(bsz * tgt_len, embed_dim),
                        prepared["w_out"], prepared["b_out"], out_dtype=jnp.float32)
    z = z2d.reshape(bsz, tgt_len, embed_dim).transpose(1, 0, 2)
    return z, attn_w


# ----------------------------------------------------------------------------
# Pure-JAX f32 reference for the correctness sanity check.
# ----------------------------------------------------------------------------
def reference(params, query, key, value, num_heads):
    tgt_len, bsz, embed_dim = query.shape
    src_len = key.shape[0]
    head_dim = embed_dim // num_heads
    scaling = float(head_dim) ** (-0.5)
    lin = lambda x, w, b: x @ w.T + b
    q = lin(query, params["q_w"], params["q_b"]) * scaling
    k = lin(key, params["k_w"], params["k_b"])
    v = lin(value, params["v_w"], params["v_b"])
    q = q.reshape(tgt_len, bsz * num_heads, head_dim).transpose(1, 0, 2)
    k = k.reshape(src_len, bsz * num_heads, head_dim).transpose(1, 0, 2)
    v = v.reshape(src_len, bsz * num_heads, head_dim).transpose(1, 0, 2)
    s = jnp.einsum("btd,bsd->bts", q, k)
    p = jax.nn.softmax(s, axis=-1)
    o = jnp.einsum("bts,bsd->btd", p, v)
    o = o.transpose(1, 0, 2).reshape(tgt_len, bsz, embed_dim)
    z = lin(o, params["out_w"], params["out_b"])
    w_avg = p.reshape(bsz, num_heads, tgt_len, src_len).sum(axis=1) / num_heads
    return z, w_avg


if __name__ == "__main__":
    embed_dim, num_heads = 128, 4          # head_dim = 32
    tgt_len, src_len, batch = 8, 8, 2

    root = jax.random.PRNGKey(0)
    k_par, k_q, k_k, k_v = jax.random.split(root, 4)
    params = init_params(k_par, embed_dim)
    prepared = prepare_mha_weights(params, embed_dim, num_heads)   # one-time packing

    query = jax.random.normal(k_q, (tgt_len, batch, embed_dim), jnp.float32)
    key = jax.random.normal(k_k, (src_len, batch, embed_dim), jnp.float32)
    value = jax.random.normal(k_v, (src_len, batch, embed_dim), jnp.float32)

    # bf16 MXU inputs -> looser tolerances than the old f32-only version.
    Z_TOL = dict(atol=3e-2, rtol=3e-2)
    W_TOL = dict(atol=2e-2, rtol=3e-2)

    # 1) fully separate q / k / v (three independent projections).
    z, attn_w = my_multihead_attention(prepared, query, key, value, num_heads)
    jax.block_until_ready((z, attn_w))
    z_ref, w_ref = reference(params, query, key, value, num_heads)
    assert z.shape == (tgt_len, batch, embed_dim)
    assert attn_w.shape == (batch, tgt_len, src_len)
    assert jnp.allclose(z, z_ref, **Z_TOL)
    assert jnp.allclose(attn_w, w_ref, **W_TOL)

    # 2) key is value (fused KV projection + packed attention inputs).
    z2, w2 = my_multihead_attention(prepared, query, key, key, num_heads)
    jax.block_until_ready((z2, w2))
    z2_ref, w2_ref = reference(params, query, key, key, num_heads)
    assert jnp.allclose(z2, z2_ref, **Z_TOL)
    assert jnp.allclose(w2, w2_ref, **W_TOL)

    # 3) self-attention (fused QKV projection + packed attention inputs).
    z3, w3 = my_multihead_attention(prepared, query, query, query, num_heads)
    jax.block_until_ready((z3, w3))
    z3_ref, w3_ref = reference(params, query, query, query, num_heads)
    assert jnp.allclose(z3, z3_ref, **Z_TOL)
    assert jnp.allclose(w3, w3_ref, **W_TOL)

    print("KERNEL_OK")
</pallas_src>

<mosaic_0001>
module attributes {stable_mosaic.version = 11 : i64} {
  func.func @_linear_kernel(%arg0: i32, %arg1: i32, %arg2: i32, %arg3: memref<16x128xf32, #tpu.memory_space<vmem>>, %arg4: memref<128x128xbf16, #tpu.memory_space<vmem>>, %arg5: memref<1x128xf32, #tpu.memory_space<vmem>>, %arg6: memref<16x128xbf16, #tpu.memory_space<vmem>>, %arg7: memref<16x128xf32, #tpu.memory_space<vmem>>) attributes {dimension_semantics = [#tpu.dimension_semantics<parallel>, #tpu.dimension_semantics<parallel>, #tpu.dimension_semantics<arbitrary>], iteration_bounds = array<i64: 1, 1, 1>, scalar_prefetch = 0 : i64, scratch_operands = 1 : i64, tpu.core_type = #tpu.core_type<tc>, window_params = [{transform_indices = @transform_0, window_bounds = array<i64: 16, 128>}, {transform_indices = @transform_1, window_bounds = array<i64: 128, 128>}, {transform_indices = @transform_2, window_bounds = array<i64: 1, 128>}, {transform_indices = @transform_3, window_bounds = array<i64: 16, 128>}]} {
    %c0_i32 = arith.constant 0 : i32
    %0 = arith.cmpi eq, %arg2, %c0_i32 : i32
    %1 = arith.extui %0 : i1 to i32
    %c0_i32_0 = arith.constant 0 : i32
    %2 = arith.cmpi ne, %1, %c0_i32_0 : i32
    scf.if %2 {
      %cst_10 = arith.constant 0.000000e+00 : f32
      %13 = vector.broadcast %cst_10 : f32 to vector<16x128xf32>
      %c0_11 = arith.constant 0 : index
      %c0_12 = arith.constant 0 : index
      %14 = vector.load %arg7[%c0_11, %c0_12] : memref<16x128xf32, #tpu.memory_space<vmem>>, vector<16x128xf32>
      tpu.vector_store %arg7[%c0_11, %c0_12], %13 {strides = array<i32>} : memref<16x128xf32, #tpu.memory_space<vmem>>, vector<16x128xf32>,
    } else {
    }
    %c0 = arith.constant 0 : index
    %c0_1 = arith.constant 0 : index
    %3 = vector.load %arg7[%c0, %c0_1] : memref<16x128xf32, #tpu.memory_space<vmem>>, vector<16x128xf32>
    %c0_2 = arith.constant 0 : index
    %c0_3 = arith.constant 0 : index
    %4 = vector.load %arg3[%c0_2, %c0_3] : memref<16x128xf32, #tpu.memory_space<vmem>>, vector<16x128xf32>
    %5 = arith.truncf %4 : vector<16x128xf32> to vector<16x128xbf16>
    %c0_4 = arith.constant 0 : index
    %c0_5 = arith.constant 0 : index
    %6 = vector.load %arg4[%c0_4, %c0_5] : memref<128x128xbf16, #tpu.memory_space<vmem>>, vector<128x128xbf16>
    %cst = arith.constant dense<0.000000e+00> : vector<16x128xf32>
    %7 = tpu.matmul %5, %6, %cst {dimension_numbers = #tpu.dot_dimension_numbers<[1], [0], [0], [1], [0, 0, 1, 1], [], []>} : vector<16x128xbf16>, vector<128x128xbf16>, vector<16x128xf32> -> vector<16x128xf32>
    %8 = arith.addf %3, %7 : vector<16x128xf32>
    %c0_6 = arith.constant 0 : index
    %c0_7 = arith.constant 0 : index
    %9 = vector.load %arg7[%c0_6, %c0_7] : memref<16x128xf32, #tpu.memory_space<vmem>>, vector<16x128xf32>
    tpu.vector_store %arg7[%c0_6, %c0_7], %8 {strides = array<i32>} : memref<16x128xf32, #tpu.memory_space<vmem>>, vector<16x128xf32>,
    %c0_i32_8 = arith.constant 0 : i32
    %10 = arith.cmpi eq, %arg2, %c0_i32_8 : i32
    %11 = arith.extui %10 : i1 to i32
    %c0_i32_9 = arith.constant 0 : i32
    %12 = arith.cmpi ne, %11, %c0_i32_9 : i32
    scf.if %12 {
      %c0_10 = arith.constant 0 : index
      %c0_11 = arith.constant 0 : index
      %13 = vector.load %arg7[%c0_10, %c0_11] : memref<16x128xf32, #tpu.memory_space<vmem>>, vector<16x128xf32>
      %c0_12 = arith.constant 0 : index
      %c0_13 = arith.constant 0 : index
      %14 = vector.load %arg5[%c0_12, %c0_13] : memref<1x128xf32, #tpu.memory_space<vmem>>, vector<1x128xf32>
      %15 = vector.broadcast %14 : vector<1x128xf32> to vector<16x128xf32>
      %16 = arith.addf %13, %15 : vector<16x128xf32>
      %17 = arith.truncf %16 : vector<16x128xf32> to vector<16x128xbf16>
      %c0_14 = arith.constant 0 : index
      %c0_15 = arith.constant 0 : index
      %18 = vector.load %arg6[%c0_14, %c0_15] : memref<16x128xbf16, #tpu.memory_space<vmem>>, vector<16x128xbf16>
      tpu.vector_store %arg6[%c0_14, %c0_15], %17 {strides = array<i32>} : memref<16x128xbf16, #tpu.memory_space<vmem>>, vector<16x128xbf16>,
    } else {
    }
    return
  }
  func.func @transform_0(%arg0: i32, %arg1: i32, %arg2: i32) -> (i32, i32) {
    %c0_i32 = arith.constant 0 : i32
    return %arg0, %arg2 : i32, i32
  }
  func.func @transform_1(%arg0: i32, %arg1: i32, %arg2: i32) -> (i32, i32) {
    %c0_i32 = arith.constant 0 : i32
    return %arg2, %arg1 : i32, i32
  }
  func.func @transform_2(%arg0: i32, %arg1: i32, %arg2: i32) -> (i32, i32) {
    %c0_i32 = arith.constant 0 : i32
    %c0_i32_0 = arith.constant 0 : i32
    return %c0_i32, %arg1 : i32, i32
  }
  func.func @transform_3(%arg0: i32, %arg1: i32, %arg2: i32) -> (i32, i32) {
    %c0_i32 = arith.constant 0 : i32
    return %arg0, %arg1 : i32, i32
  }
}

</mosaic_0001>

<bundles_post_ra>
// kernel: tpu_custom_call.1
= control target key start
LH: loop header
LB: loop body
LE: loop exit
PB: predicated region body
PF: predicated region fallthrough
CT: control target
= control target key end

     0   :  { %8 = vsyncpa [#allocation4], 0  ;;  %s416_s0 = inlined_call_operand.hbm [shape: f32[16,128], index: 0, kind: input, shape index: {}]   ;;  %s417_s1 = inlined_call_operand.hbm [shape: bf16[128,128], index: 1, kind: input, shape index: {}]   ;;  %s418_s2 = inlined_call_operand.vmem [shape: f32[1,128], index: 2, kind: input, shape index: {}]   ;;  %s419_s3 = inlined_call_operand.hbm [shape: bf16[16,128], index: 3, kind: output, shape index: {}]  }
   0x1   :  { %9 = vsyncpa [#allocation7], 0 }
   0x2   :  { %10 = vsyncpa [#allocation5], 0  ;;  %s342_s12 = smov [#allocation3]   ;;  %s270_s16 = scalar_lea.hbm %s416_s0, 256 }
   0x3   :  { %s16_s13 = sshll.u32 %s342_s12, 4  ;;  %p271_p0 = scmp.ne.s32.totalorder %s416_s0, %s270_s16  ;;  %s17_s13 = int_to_ptr.vmem [resolvable:$true] %s16_s13 }
   0x4   :  { %p274_p1 = scmp.lt.u32.totalorder %s270_s16, %s416_s0 }
   0x6   :  { %p276_p2 = pnand %p274_p1, %p271_p0 }
   0x8   :  { %279 = shalt.err (!%p276_p2)
}
   0x9   :  { %s280_s21 = scalar_lea.vmem %s17_s13, 256  ;;  %p285_p4 = scmp.lt.s32.totalorder %s17_s13, %s17_s13 }
   0xa   :  { %p281_p3 = scmp.ne.s32.totalorder %s17_s13, %s280_s21  ;;  %p286_p5 = scmp.lt.s32.totalorder %s280_s21, %s280_s21 }
   0xc   :  { %p287_p6 = por %p286_p5, %p285_p4 }
   0xe   :  { %p288_p7 = pnand %p287_p6, %p281_p3 }
  0x10   :  { %291 = shalt.err (!%p288_p7)
}
  0x11   :  { %s343_s22 = smov 128   ;;  %s344_s23 = smov 8  }
  0x12   :  { %22 = dma.hbm_to_vmem [thread:$0]  %s416_s0, 256, %s17_s13, [#allocation4], %s343_s22, %s343_s22, %s344_s23  }
  0x13   :  { %s345_s26 = smov [#allocation6]   ;;  %s292_s30 = scalar_lea.hbm %s417_s1, 1024 }
  0x14   :  { %s28_s27 = sshll.u32 %s345_s26, 4  ;;  %p293_p8 = scmp.ne.s32.totalorder %s417_s1, %s292_s30  ;;  %s29_s27 = int_to_ptr.vmem [resolvable:$true] %s28_s27 }
  0x15   :  { %p296_p9 = scmp.lt.u32.totalorder %s292_s30, %s417_s1 }
  0x17   :  { %p298_p10 = pnand %p296_p9, %p293_p8 }
  0x19   :  { %301 = shalt.err (!%p298_p10)
}
  0x1a   :  { %s302_s8 = scalar_lea.vmem %s29_s27, 1024  ;;  %p307_p12 = scmp.lt.s32.totalorder %s29_s27, %s29_s27 }
  0x1b   :  { %p303_p11 = scmp.ne.s32.totalorder %s29_s27, %s302_s8  ;;  %p308_p13 = scmp.lt.s32.totalorder %s302_s8, %s302_s8 }
  0x1d   :  { %p309_p0 = por %p308_p13, %p307_p12 }
  0x1f   :  { %p310_p1 = pnand %p309_p0, %p303_p11 }
  0x21   :  { %313 = shalt.err (!%p310_p1)
}
  0x22   :  { %s346_s0 = smov 64   ;;  %s347_s9 = smov 4  }
  0x23   :  { %34 = dma.hbm_to_vmem [thread:$0]  %s417_s1, 1024, %s29_s27, [#allocation7], %s346_s0, %s346_s0, %s347_s9  }
  0x24   :  { %336 = dma.done.wait [#allocation4], 256  }
  0x25   :  { %337 = vsyncadd [#allocation4], 4294967040 }
  0x26   :  { %338 = dma.done.wait [#allocation7], 1024  }
  0x27   :  { %339 = vsyncadd [#allocation7], 4294966272  ;;  %v348_v0 = vmov 0.0   ;;  %vm349_vm0 = vmmov 0   ;;  %v262_v1 = vld [vmem:[#allocation6] sm:$0xff]   ;;  %v263_v2 = vld [vmem:[#allocation6 + $0x8] sm:$0xff]  }
  0x28   :  { %233 = vmatprep.subr.bf16.mxu0 %v348_v0  ;;  %249 = vmatprep.mubr.msk.bf16.mxu0 %vm349_vm0, %v348_v0  ;;  %v264_v3 = vld [vmem:[#allocation6 + $0x10] sm:$0xff]   ;;  %v265_v4 = vld [vmem:[#allocation6 + $0x18] sm:$0xff]   ;;  %v266_v5 = vld [vmem:[#allocation6 + $0x20] sm:$0xff]   ;;  %s350_s13 = smov [#allocation8]  }
  0x29   :  { %234 = vmatpush3.bf16.msra.mxu0 %v262_v1  ;;  %v267_v6 = vld [vmem:[#allocation6 + $0x28] sm:$0xff]   ;;  %v268_v7 = vld [vmem:[#allocation6 + $0x30] sm:$0xff]   ;;  %v269_v8 = vld [vmem:[#allocation6 + $0x38] sm:$0xff]   ;;  %s193_s14 = sshll.u32 %s350_s13, 4  ;;  %s194_s14 = int_to_ptr.vmem [resolvable:$true] %s193_s14 }
  0x2a   :  { %235 = vmatprep.subr.bf16.mxu0 %v348_v0  ;;  %v52_v9 = vld [vmem:[#allocation3] sm:$0xff]  ;;  %v53_v10 = vld [vmem:[#allocation3 + $0x8] sm:$0xff]  ;;  %s314_s15 = scalar_lea.vmem %s194_s14, 128  ;;  %p319_p3 = scmp.lt.s32.totalorder %s194_s14, %s194_s14 }
  0x2b   :  { %v54_v11 = vpack.c.bf16 %v53_v10, %v52_v9  ;;  %v214_v13 = vld [vmem:[%s418_s2] ss:$0 sm:$0xff]  ;;  %p315_p2 = scmp.ne.s32.totalorder %s194_s14, %s314_s15  ;;  %p320_p4 = scmp.lt.s32.totalorder %s314_s15, %s314_s15 }
  0x2d   :  { %236 = vmatpush3.bf16.msra.mxu0 %v263_v2  ;;  %p321_p5 = por %p320_p4, %p319_p3 }
  0x2e   :  { %237 = vmatprep.subr.bf16.mxu0 %v348_v0 }
  0x2f   :  { %p322_p6 = pnand %p321_p5, %p315_p2 }
  0x31   :  { %238 = vmatpush3.bf16.msra.mxu0 %v264_v3 }
  0x32   :  { %239 = vmatprep.subr.bf16.mxu0 %v348_v0 }
  0x35   :  { %240 = vmatpush3.bf16.msra.mxu0 %v265_v4 }
  0x36   :  { %241 = vmatprep.subr.bf16.mxu0 %v348_v0 }
  0x39   :  { %242 = vmatpush3.bf16.msra.mxu0 %v266_v5 }
  0x3a   :  { %243 = vmatprep.subr.bf16.mxu0 %v348_v0 }
  0x3d   :  { %244 = vmatpush3.bf16.msra.mxu0 %v267_v6 }
  0x3e   :  { %245 = vmatprep.subr.bf16.mxu0 %v348_v0 }
  0x41   :  { %246 = vmatpush3.bf16.msra.mxu0 %v268_v7 }
  0x42   :  { %247 = vmatprep.subr.bf16.mxu0 %v348_v0 }
  0x45   :  { %248 = vmatpush3.bf16.msra.mxu0 %v269_v8 }
  0x48   :  { %250 = vmatmul.mubr.bf16.vlgmr.msra.gmra.mrb[0].mxu0 %v54_v11 }
 0x11b   :  { %v153_v12 = vpop.f32.mrb[0].mxu0 }
 0x11c   :  { %v251_v14 = vpop.f32.mrb[1].mxu0  ;;  %v176_v16 = vadd.f32 %v214_v13, %v153_v12 }
 0x11d   :  { %v156_v15 = vpop.f32.mrb[2].mxu0 }
 0x11e   :  { %v177_v17 = vadd.f32 %v214_v13, %v156_v15  ;;  %v252_v18 = vpop.f32.mrb[3].mxu0 }
 0x120   :  { %v222_v19 = vpack.c.bf16 %v177_v17, %v176_v16 }
 0x122   :  { %223 = vst [vmem:[#allocation8] sm:$0xff] %v222_v19  }
 0x123   :  { %325 = shalt.err (!%p322_p6)
}
 0x124   :  { %s326_s2 = scalar_lea.hbm %s419_s3, 128 }
 0x125   :  { %p327_p7 = scmp.ne.s32.totalorder %s419_s3, %s326_s2  ;;  %p330_p8 = scmp.lt.u32.totalorder %s326_s2, %s419_s3 }
 0x127   :  { %p332_p9 = pnand %p330_p8, %p327_p7 }
 0x129   :  { %335 = shalt.err (!%p332_p9)
}
 0x12a   :  { %199 = dma.vmem_to_hbm [thread:$0]  %s194_s14, 128, %s419_s3, [#allocation5], %s346_s0, %s346_s0, %s347_s9  }
 0x12b   :  { %340 = dma.done.wait [#allocation5], 128  }
 0x12c   :  { %341 = vsyncadd [#allocation5], 4294967168 }
 0x12d   :  { %203 = vsyncpa [#allocation4], 1 }
 0x12e   :  { %204 = vsyncpa [#allocation7], 1 }
 0x12f   :  { %205 = vsyncpa [#allocation5], 1 }

</bundles_post_ra>
